<compile_context>
chip_gen: v5e
topology: v5e:2x2
jax: 0.10.0
libtpu: 0.0.40
codegen_flags: <defaults>
</compile_context>

<pallas_src>
import jax
import jax.numpy as jnp
from jax import lax
from jax.experimental import pallas as pl
from jax.experimental.pallas import tpu as pltpu


# ------------------------- shared depthwise 3x3 compute (roll-based) -------------------------
def _depthwise_3x3(x, w, row, col, H, W):
    """3x3 depthwise conv, padding=1, on a channel-major flattened-spatial tile.

    x   : (C, H*W) f32, spatial flattened onto the lane axis (lane-dense).
    w   : (C, 9)   f32 per-channel taps, laid out as kh*3+kw.
    row, col : (1, H*W) int32 row / column index of each flattened position
               (precomputed host-side to avoid in-kernel vector integer div/mod).

    Shifted taps are produced just-in-time with pltpu.roll (XLU lane rotation) plus a
    border mask — no concatenate-built copies, at most one shifted tile live at a time.
    """
    HW = H * W
    acc = x * w[:, 4:5]                                   # centre tap (dh=0, dw=0)
    for kh in range(3):
        dh = kh - 1
        for kw in range(3):
            dwc = kw - 1
            if dh == 0 and dwc == 0:
                continue
            d = dh * W + dwc                              # flattened source offset
            t = pltpu.roll(x, (-d) % HW, axis=1)          # t[p] == x[p + d] (mod HW)
            m = None
            if dh == -1:
                m = row >= 1
            elif dh == 1:
                m = row <= H - 2
            if dwc == -1:
                cm = col >= 1
                m = cm if m is None else jnp.logical_and(m, cm)
            elif dwc == 1:
                cm = col <= W - 2
                m = cm if m is None else jnp.logical_and(m, cm)
            t = jnp.where(m, t, 0.0)                      # zero padding at the image border
            acc = acc + t * w[:, kh * 3 + kw:kh * 3 + kw + 1]
    return acc


def _row_col_indices(H, W):
    p = jnp.arange(H * W, dtype=jnp.int32)
    return jnp.stack([p // W, p % W], axis=0)             # (2, HW)


# ------------------------------ fused single-kernel path (primary) ------------------------------
def _separable_conv2d_fused(x, dw_w, pw_w, gamma, beta, eps):
    N, C, H, W = x.shape
    P = pw_w.shape[0]
    HW = H * W
    inv_count = 1.0 / float(N * HW)

    x3 = x.reshape(N, C, HW)                               # free reshape (minor dims merge)
    w9 = dw_w.reshape(C, 9).astype(jnp.float32)
    pw = pw_w.astype(jnp.float32)
    g2 = gamma.astype(jnp.float32).reshape(C, 1)
    b2 = beta.astype(jnp.float32).reshape(C, 1)
    rc = _row_col_indices(H, W)

    def kernel(rc_ref, w_ref, pw_ref, g_ref, b_ref, x_ref, o_ref, dw_sc, s_sc):
        n = pl.program_id(0)

        @pl.when(n == 0)
        def _init():
            s_sc[...] = jnp.zeros_like(s_sc)

        row = rc_ref[0:1, :]
        col = rc_ref[1:2, :]
        acc = _depthwise_3x3(x_ref[0].astype(jnp.float32),
                             w_ref[...].astype(jnp.float32), row, col, H, W)
        dw_sc[n] = acc                                     # intermediate stays in VMEM
        s_sc[...] = s_sc[...] + jnp.sum(acc, axis=1, keepdims=True)

        @pl.when(n == N - 1)
        def _finalize():
            mean = s_sc[...] * inv_count                   # (C, 1)
            # Centered variance: second pass over the VMEM-resident intermediate
            # (avoids E[x^2]-mean^2 cancellation; VMEM reads are cheap).
            var = jnp.zeros((C, 1), jnp.float32)
            for nn in range(N):
                d = dw_sc[nn] - mean
                var = var + jnp.sum(d * d, axis=1, keepdims=True)
            var = var * inv_count
            scale = g_ref[...] * lax.rsqrt(var + eps)      # (C, 1), rsqrt on the EUP
            shift = b_ref[...] - mean * scale              # (C, 1)
            pwm = pw_ref[...]                              # (P, C)
            for nn in range(N):
                xin = dw_sc[nn] * scale + shift            # (C, HW) normalized
                # MXU skipped on purpose: K=C and P are tiny here (VPU broadcast FMAs).
                out = pwm[:, 0:1] * xin[0:1, :]            # (P, HW)
                for c in range(1, C):
                    out = out + pwm[:, c:c + 1] * xin[c:c + 1, :]
                o_ref[nn] = out.astype(o_ref.dtype)

    out = pl.pallas_call(
        kernel,
        out_shape=jax.ShapeDtypeStruct((N, P, HW), x.dtype),
        grid=(N,),
        in_specs=[
            pl.BlockSpec((2, HW), lambda n: (0, 0)),       # row/col indices (fetched once)
            pl.BlockSpec((C, 9), lambda n: (0, 0)),        # depthwise weights
            pl.BlockSpec((P, C), lambda n: (0, 0)),        # pointwise weights
            pl.BlockSpec((C, 1), lambda n: (0, 0)),        # gamma
            pl.BlockSpec((C, 1), lambda n: (0, 0)),        # beta
            pl.BlockSpec((1, C, HW), lambda n: (n, 0, 0)), # one batch element per step
        ],
        # Full output written at the last step, flushed to HBM once (constant block index).
        out_specs=pl.BlockSpec((N, P, HW), lambda n: (0, 0, 0)),
        scratch_shapes=[
            pltpu.VMEM((N, C, HW), jnp.float32),           # depthwise intermediate (resident)
            pltpu.VMEM((C, 1), jnp.float32),               # per-channel running sum (BN mean)
        ],
        # Batch axis must be sequential: stats + intermediate are resident across it.
        compiler_params=pltpu.CompilerParams(dimension_semantics=("arbitrary",)),
    )(rc, w9, pw, g2, b2, x3)
    return out.reshape(N, P, H, W)


# ------------------------------ two-pass fallback (large shapes) ------------------------------
def _pick_spatial_tile(hw, max_tile=16384):
    """Lane-dense spatial tile for the pointwise pass.

    <= max_tile: one block spanning the whole flattened spatial extent (minimizes the
    ~0.35us/step grid overhead).  Larger: a multiple-of-128 tile; the last partial block is
    handled by a pl.cdiv grid (Pallas boundary masking), never a giant full-HW block.
    """
    if hw <= max_tile:
        return hw
    return (max_tile // 128) * 128


def _separable_conv2d_two_pass(x, dw_w, pw_w, gamma, beta, eps,
                               intermediate_dtype=jnp.bfloat16):
    N, C, H, W = x.shape
    P = pw_w.shape[0]
    HW = H * W
    count = N * HW

    x3 = x.reshape(N, C, HW)
    w9 = dw_w.reshape(C, 9).astype(jnp.float32)
    rc = _row_col_indices(H, W)

    # ---- pass 1: depthwise 3x3 + fused BN statistics (per-batch slabs, megacore-safe) ----
    def dw_kernel(rc_ref, w_ref, x_ref, o_ref, s_ref, ss_ref):
        row = rc_ref[0:1, :]
        col = rc_ref[1:2, :]
        acc = _depthwise_3x3(x_ref[0].astype(jnp.float32),
                             w_ref[...].astype(jnp.float32), row, col, H, W)
        # bf16 intermediate halves HBM traffic; accumulation and BN stats stay f32.
        o_ref[0] = acc.astype(o_ref.dtype)
        # One stat slab per batch element -> no cross-step accumulation, so the batch
        # axis can be 'parallel' (sharded across v7x's two TensorCores).
        s_ref[0] = jnp.sum(acc, axis=1, keepdims=True)
        ss_ref[0] = jnp.sum(acc * acc, axis=1, keepdims=True)
        # TODO(synk): sum/sum-of-squares is cancellation-prone at huge N*H*W counts;
        # switch to centered/Welford partials if production statistics demand it.

    dw, s_part, ss_part = pl.pallas_call(
        dw_kernel,
        out_shape=(
            jax.ShapeDtypeStruct((N, C, HW), intermediate_dtype),
            jax.ShapeDtypeStruct((N, C, 1), jnp.float32),
            jax.ShapeDtypeStruct((N, C, 1), jnp.float32),
        ),
        grid=(N,),
        in_specs=[
            pl.BlockSpec((2, HW), lambda n: (0, 0)),
            pl.BlockSpec((C, 9), lambda n: (0, 0)),
            pl.BlockSpec((1, C, HW), lambda n: (n, 0, 0)),
        ],
        out_specs=(
            pl.BlockSpec((1, C, HW), lambda n: (n, 0, 0)),
            pl.BlockSpec((1, C, 1), lambda n: (n, 0, 0)),
            pl.BlockSpec((1, C, 1), lambda n: (n, 0, 0)),
        ),
        compiler_params=pltpu.CompilerParams(dimension_semantics=("parallel",)),
    )(rc, w9, x3)

    # BatchNorm2d training-mode statistics (biased variance) + exact BN fold into pointwise.
    s = jnp.sum(s_part[:, :, 0], axis=0)
    ss = jnp.sum(ss_part[:, :, 0], axis=0)
    mean = s / count
    var = ss / count - mean * mean
    scale = gamma.astype(jnp.float32) / jnp.sqrt(var + eps)
    shift = beta.astype(jnp.float32) - mean * scale
    w_eff = pw_w.astype(jnp.float32) * scale[None, :]                  # (P, C)
    b_eff = (pw_w.astype(jnp.float32) @ shift).reshape(P, 1)           # (P, 1)

    # ---- pass 2: BN-folded pointwise 1x1 conv, lane-dense output slabs ----
    TM = _pick_spatial_tile(HW)
    grid_m = pl.cdiv(HW, TM)

    def pw_kernel(x_ref, w_ref, b_ref, o_ref):
        xv = x_ref[0].astype(jnp.float32)                              # (C, TM)
        wv = w_ref[...]                                                # (P, C)
        out = jnp.broadcast_to(b_ref[...].astype(jnp.float32), (P, TM))
        for c in range(C):
            out = out + wv[:, c:c + 1] * xv[c:c + 1, :]
        o_ref[0] = out.astype(o_ref.dtype)

    out = pl.pallas_call(
        pw_kernel,
        out_shape=jax.ShapeDtypeStruct((N, P, HW), x.dtype),
        grid=(N, grid_m),
        in_specs=[
            pl.BlockSpec((1, C, TM), lambda n, m: (n, 0, m)),
            pl.BlockSpec((P, C), lambda n, m: (0, 0)),                 # fetched once
            pl.BlockSpec((P, 1), lambda n, m: (0, 0)),                 # fetched once
        ],
        out_specs=pl.BlockSpec((1, P, TM), lambda n, m: (n, 0, m)),
        compiler_params=pltpu.CompilerParams(
            dimension_semantics=("parallel", "parallel")),
    )(dw, w_eff, b_eff)
    return out.reshape(N, P, H, W)


# ------------------------------------------ wrapper ------------------------------------------
def separable_conv2d(x, dw_w, pw_w, gamma, beta, eps=1e-5, *,
                     force_two_pass=False, fused_vmem_budget=10 * 1024 * 1024):
    """x: (N, C, H, W) NCHW; dw_w: (C, 3, 3) (= torch conv1.weight[:, 0]);
    pw_w: (P, C) (= torch pointwise.weight[:, :, 0, 0]); gamma/beta: (C,) BN affine."""
    N, C, H, W = x.shape
    P = pw_w.shape[0]
    HW = H * W
    # Resident VMEM for the fused path: f32 intermediate + full output block +
    # a double-buffered per-batch input block (+ small weight/index blocks).
    fused_bytes = 4 * (N * C * HW + N * P * HW + 2 * C * HW) + 8 * HW
    if force_two_pass or fused_bytes > fused_vmem_budget:
        return _separable_conv2d_two_pass(x, dw_w, pw_w, gamma, beta, eps)
    return _separable_conv2d_fused(x, dw_w, pw_w, gamma, beta, eps)


# --------------------------------------- pure-JAX reference ---------------------------------------
def separable_conv2d_ref(x, dw_w, pw_w, gamma, beta, eps=1e-5):
    N, C, H, W = x.shape
    xhw = jnp.transpose(x, (0, 2, 3, 1))
    k = jnp.transpose(dw_w, (1, 2, 0)).reshape(3, 3, 1, C)             # HWIO, groups=C
    dw = lax.conv_general_dilated(
        xhw, k, window_strides=(1, 1), padding=((1, 1), (1, 1)),
        dimension_numbers=("NHWC", "HWIO", "NHWC"), feature_group_count=C)
    mean = jnp.mean(dw, axis=(0, 1, 2))
    var = jnp.mean((dw - mean) ** 2, axis=(0, 1, 2))
    dwn = (dw - mean) / jnp.sqrt(var + eps) * gamma + beta
    out = jnp.einsum("nhwc,pc->nhwp", dwn, pw_w)
    return jnp.transpose(out, (0, 3, 1, 2))


if __name__ == "__main__":
    inplanes, planes = 4, 8
    N, H, W = 2, 16, 16

    key = jax.random.PRNGKey(0)
    k_x, k_dw, k_pw = jax.random.split(key, 3)

    x = jax.random.normal(k_x, (N, inplanes, H, W), dtype=jnp.float32)
    # torch conv1.weight is (inplanes, 1, 3, 3); stored here as (inplanes, 3, 3)
    dw_w = jax.random.normal(k_dw, (inplanes, 3, 3), dtype=jnp.float32) * 0.1
    # torch pointwise.weight is (planes, inplanes, 1, 1); stored here as (planes, inplanes)
    pw_w = jax.random.normal(k_pw, (planes, inplanes), dtype=jnp.float32) * 0.1
    # BatchNorm2d default init: weight=1, bias=0
    gamma = jnp.ones((inplanes,), dtype=jnp.float32)
    beta = jnp.zeros((inplanes,), dtype=jnp.float32)

    ref = separable_conv2d_ref(x, dw_w, pw_w, gamma, beta)

    # Primary path: fully fused single kernel (intermediate never leaves VMEM), f32 exact.
    out = jax.block_until_ready(separable_conv2d(x, dw_w, pw_w, gamma, beta))
    assert out.shape == (N, planes, H, W)
    err = float(jnp.max(jnp.abs(out - ref)))
    assert jnp.allclose(out, ref, atol=1e-4, rtol=1e-4), err

    # Fallback path (large-shape route): two passes with a bf16 intermediate; the looser
    # tolerance reflects only the bf16 storage of the depthwise intermediate.
    out2 = jax.block_until_ready(
        separable_conv2d(x, dw_w, pw_w, gamma, beta, force_two_pass=True))
    err2 = float(jnp.max(jnp.abs(out2 - ref)))
    assert jnp.allclose(out2, ref, atol=2e-2, rtol=2e-2), err2

    print("KERNEL_OK")
</pallas_src>

<mosaic_0001>
module attributes {stable_mosaic.version = 11 : i64} {
  func.func @kernel(%arg0: i32, %arg1: memref<2x256xi32, #tpu.memory_space<vmem>>, %arg2: memref<4x9xf32, #tpu.memory_space<vmem>>, %arg3: memref<8x4xf32, #tpu.memory_space<vmem>>, %arg4: memref<4x1xf32, #tpu.memory_space<vmem>>, %arg5: memref<4x1xf32, #tpu.memory_space<vmem>>, %arg6: memref<1x4x256xf32, #tpu.memory_space<vmem>>, %arg7: memref<2x8x256xf32, #tpu.memory_space<vmem>>, %arg8: memref<2x4x256xf32, #tpu.memory_space<vmem>>, %arg9: memref<4x1xf32, #tpu.memory_space<vmem>>) attributes {dimension_semantics = [#tpu.dimension_semantics<arbitrary>], iteration_bounds = array<i64: 2>, scalar_prefetch = 0 : i64, scratch_operands = 2 : i64, tpu.core_type = #tpu.core_type<tc>, window_params = [{pipeline_mode = #tpu.pipeline_mode<synchronous>, transform_indices = @transform_0, window_bounds = array<i64: 2, 256>}, {pipeline_mode = #tpu.pipeline_mode<synchronous>, transform_indices = @transform_1, window_bounds = array<i64: 4, 9>}, {pipeline_mode = #tpu.pipeline_mode<synchronous>, transform_indices = @transform_2, window_bounds = array<i64: 8, 4>}, {pipeline_mode = #tpu.pipeline_mode<synchronous>, transform_indices = @transform_3, window_bounds = array<i64: 4, 1>}, {pipeline_mode = #tpu.pipeline_mode<synchronous>, transform_indices = @transform_4, window_bounds = array<i64: 4, 1>}, {transform_indices = @transform_5, window_bounds = array<i64: 1, 4, 256>}, {pipeline_mode = #tpu.pipeline_mode<synchronous>, transform_indices = @transform_6, window_bounds = array<i64: 2, 8, 256>}]} {
    %c0_i32 = arith.constant 0 : i32
    %0 = arith.cmpi eq, %arg0, %c0_i32 : i32
    %1 = arith.extui %0 : i1 to i32
    %c0_i32_0 = arith.constant 0 : i32
    %2 = arith.cmpi ne, %1, %c0_i32_0 : i32
    scf.if %2 {
      %cst_35 = arith.constant 0.000000e+00 : f32
      %123 = vector.broadcast %cst_35 : f32 to vector<4x1xf32>
      %c0_36 = arith.constant 0 : index
      %c0_37 = arith.constant 0 : index
      %124 = vector.load %arg9[%c0_36, %c0_37] : memref<4x1xf32, #tpu.memory_space<vmem>>, vector<4x1xf32>
      tpu.vector_store %arg9[%c0_36, %c0_37], %123 {strides = array<i32>} : memref<4x1xf32, #tpu.memory_space<vmem>>, vector<4x1xf32>,
    } else {
    }
    %c0 = arith.constant 0 : index
    %c0_1 = arith.constant 0 : index
    %3 = vector.load %arg1[%c0, %c0_1] : memref<2x256xi32, #tpu.memory_space<vmem>>, vector<1x256xi32>
    %c1 = arith.constant 1 : index
    %c0_2 = arith.constant 0 : index
    %4 = vector.load %arg1[%c1, %c0_2] : memref<2x256xi32, #tpu.memory_space<vmem>>, vector<1x256xi32>
    %c0_3 = arith.constant 0 : index
    %c0_4 = arith.constant 0 : index
    %c0_5 = arith.constant 0 : index
    %5 = vector.load %arg6[%c0_3, %c0_4, %c0_5] : memref<1x4x256xf32, #tpu.memory_space<vmem>>, vector<1x4x256xf32>
    %6 = vector.shape_cast %5 : vector<1x4x256xf32> to vector<4x256xf32>
    %c0_6 = arith.constant 0 : index
    %c0_7 = arith.constant 0 : index
    %7 = vector.load %arg2[%c0_6, %c0_7] : memref<4x9xf32, #tpu.memory_space<vmem>>, vector<4x9xf32>
    %8 = vector.extract_strided_slice %7 {offsets = [0, 4], sizes = [4, 1], strides = [1, 1]} : vector<4x9xf32> to vector<4x1xf32>
    %9 = vector.broadcast %8 : vector<4x1xf32> to vector<4x256xf32>
    %10 = arith.mulf %6, %9 : vector<4x256xf32>
    %c17_i32 = arith.constant 17 : i32
    %11 = tpu.dynamic_rotate %6 by %c17_i32 dim 1 : vector<4x256xf32>, i32 -> vector<4x256xf32>
    %c1_i32 = arith.constant 1 : i32
    %12 = vector.broadcast %c1_i32 : i32 to vector<1x256xi32>
    %13 = arith.cmpi sge, %3, %12 : vector<1x256xi32>
    %c1_i32_8 = arith.constant 1 : i32
    %14 = vector.broadcast %c1_i32_8 : i32 to vector<1x256xi32>
    %15 = arith.cmpi sge, %4, %14 : vector<1x256xi32>
    %16 = arith.andi %13, %15 : vector<1x256xi1>
    %cst = arith.constant 0.000000e+00 : f32
    %17 = vector.shape_cast %16 : vector<1x256xi1> to vector<1x256xi1>
    %18 = vector.broadcast %17 : vector<1x256xi1> to vector<4x256xi1>
    %19 = vector.broadcast %cst : f32 to vector<4x256xf32>
    %20 = arith.select %18, %11, %19 : vector<4x256xi1>, vector<4x256xf32>
    %21 = vector.extract_strided_slice %7 {offsets = [0, 0], sizes = [4, 1], strides = [1, 1]} : vector<4x9xf32> to vector<4x1xf32>
    %22 = vector.broadcast %21 : vector<4x1xf32> to vector<4x256xf32>
    %23 = arith.mulf %20, %22 : vector<4x256xf32>
    %24 = arith.addf %10, %23 : vector<4x256xf32>
    %c16_i32 = arith.constant 16 : i32
    %25 = tpu.dynamic_rotate %6 by %c16_i32 dim 1 : vector<4x256xf32>, i32 -> vector<4x256xf32>
    %c1_i32_9 = arith.constant 1 : i32
    %26 = vector.broadcast %c1_i32_9 : i32 to vector<1x256xi32>
    %27 = arith.cmpi sge, %3, %26 : vector<1x256xi32>
    %cst_10 = arith.constant 0.000000e+00 : f32
    %28 = vector.shape_cast %27 : vector<1x256xi1> to vector<1x256xi1>
    %29 = vector.broadcast %28 : vector<1x256xi1> to vector<4x256xi1>
    %30 = vector.broadcast %cst_10 : f32 to vector<4x256xf32>
    %31 = arith.select %29, %25, %30 : vector<4x256xi1>, vector<4x256xf32>
    %32 = vector.extract_strided_slice %7 {offsets = [0, 1], sizes = [4, 1], strides = [1, 1]} : vector<4x9xf32> to vector<4x1xf32>
    %33 = vector.broadcast %32 : vector<4x1xf32> to vector<4x256xf32>
    %34 = arith.mulf %31, %33 : vector<4x256xf32>
    %35 = arith.addf %24, %34 : vector<4x256xf32>
    %c15_i32 = arith.constant 15 : i32
    %36 = tpu.dynamic_rotate %6 by %c15_i32 dim 1 : vector<4x256xf32>, i32 -> vector<4x256xf32>
    %c1_i32_11 = arith.constant 1 : i32
    %37 = vector.broadcast %c1_i32_11 : i32 to vector<1x256xi32>
    %38 = arith.cmpi sge, %3, %37 : vector<1x256xi32>
    %c14_i32 = arith.constant 14 : i32
    %39 = vector.broadcast %c14_i32 : i32 to vector<1x256xi32>
    %40 = arith.cmpi sle, %4, %39 : vector<1x256xi32>
    %41 = arith.andi %38, %40 : vector<1x256xi1>
    %cst_12 = arith.constant 0.000000e+00 : f32
    %42 = vector.shape_cast %41 : vector<1x256xi1> to vector<1x256xi1>
    %43 = vector.broadcast %42 : vector<1x256xi1> to vector<4x256xi1>
    %44 = vector.broadcast %cst_12 : f32 to vector<4x256xf32>
    %45 = arith.select %43, %36, %44 : vector<4x256xi1>, vector<4x256xf32>
    %46 = vector.extract_strided_slice %7 {offsets = [0, 2], sizes = [4, 1], strides = [1, 1]} : vector<4x9xf32> to vector<4x1xf32>
    %47 = vector.broadcast %46 : vector<4x1xf32> to vector<4x256xf32>
    %48 = arith.mulf %45, %47 : vector<4x256xf32>
    %49 = arith.addf %35, %48 : vector<4x256xf32>
    %c1_i32_13 = arith.constant 1 : i32
    %50 = tpu.dynamic_rotate %6 by %c1_i32_13 dim 1 : vector<4x256xf32>, i32 -> vector<4x256xf32>
    %c1_i32_14 = arith.constant 1 : i32
    %51 = vector.broadcast %c1_i32_14 : i32 to vector<1x256xi32>
    %52 = arith.cmpi sge, %4, %51 : vector<1x256xi32>
    %cst_15 = arith.constant 0.000000e+00 : f32
    %53 = vector.shape_cast %52 : vector<1x256xi1> to vector<1x256xi1>
    %54 = vector.broadcast %53 : vector<1x256xi1> to vector<4x256xi1>
    %55 = vector.broadcast %cst_15 : f32 to vector<4x256xf32>
    %56 = arith.select %54, %50, %55 : vector<4x256xi1>, vector<4x256xf32>
    %57 = vector.extract_strided_slice %7 {offsets = [0, 3], sizes = [4, 1], strides = [1, 1]} : vector<4x9xf32> to vector<4x1xf32>
    %58 = vector.broadcast %57 : vector<4x1xf32> to vector<4x256xf32>
    %59 = arith.mulf %56, %58 : vector<4x256xf32>
    %60 = arith.addf %49, %59 : vector<4x256xf32>
    %c255_i32 = arith.constant 255 : i32
    %61 = tpu.dynamic_rotate %6 by %c255_i32 dim 1 : vector<4x256xf32>, i32 -> vector<4x256xf32>
    %c14_i32_16 = arith.constant 14 : i32
    %62 = vector.broadcast %c14_i32_16 : i32 to vector<1x256xi32>
    %63 = arith.cmpi sle, %4, %62 : vector<1x256xi32>
    %cst_17 = arith.constant 0.000000e+00 : f32
    %64 = vector.shape_cast %63 : vector<1x256xi1> to vector<1x256xi1>
    %65 = vector.broadcast %64 : vector<1x256xi1> to vector<4x256xi1>
    %66 = vector.broadcast %cst_17 : f32 to vector<4x256xf32>
    %67 = arith.select %65, %61, %66 : vector<4x256xi1>, vector<4x256xf32>
    %68 = vector.extract_strided_slice %7 {offsets = [0, 5], sizes = [4, 1], strides = [1, 1]} : vector<4x9xf32> to vector<4x1xf32>
    %69 = vector.broadcast %68 : vector<4x1xf32> to vector<4x256xf32>
    %70 = arith.mulf %67, %69 : vector<4x256xf32>
    %71 = arith.addf %60, %70 : vector<4x256xf32>
    %c241_i32 = arith.constant 241 : i32
    %72 = tpu.dynamic_rotate %6 by %c241_i32 dim 1 : vector<4x256xf32>, i32 -> vector<4x256xf32>
    %c14_i32_18 = arith.constant 14 : i32
    %73 = vector.broadcast %c14_i32_18 : i32 to vector<1x256xi32>
    %74 = arith.cmpi sle, %3, %73 : vector<1x256xi32>
    %c1_i32_19 = arith.constant 1 : i32
    %75 = vector.broadcast %c1_i32_19 : i32 to vector<1x256xi32>
    %76 = arith.cmpi sge, %4, %75 : vector<1x256xi32>
    %77 = arith.andi %74, %76 : vector<1x256xi1>
    %cst_20 = arith.constant 0.000000e+00 : f32
    %78 = vector.shape_cast %77 : vector<1x256xi1> to vector<1x256xi1>
    %79 = vector.broadcast %78 : vector<1x256xi1> to vector<4x256xi1>
    %80 = vector.broadcast %cst_20 : f32 to vector<4x256xf32>
    %81 = arith.select %79, %72, %80 : vector<4x256xi1>, vector<4x256xf32>
    %82 = vector.extract_strided_slice %7 {offsets = [0, 6], sizes = [4, 1], strides = [1, 1]} : vector<4x9xf32> to vector<4x1xf32>
    %83 = vector.broadcast %82 : vector<4x1xf32> to vector<4x256xf32>
    %84 = arith.mulf %81, %83 : vector<4x256xf32>
    %85 = arith.addf %71, %84 : vector<4x256xf32>
    %c240_i32 = arith.constant 240 : i32
    %86 = tpu.dynamic_rotate %6 by %c240_i32 dim 1 : vector<4x256xf32>, i32 -> vector<4x256xf32>
    %c14_i32_21 = arith.constant 14 : i32
    %87 = vector.broadcast %c14_i32_21 : i32 to vector<1x256xi32>
    %88 = arith.cmpi sle, %3, %87 : vector<1x256xi32>
    %cst_22 = arith.constant 0.000000e+00 : f32
    %89 = vector.shape_cast %88 : vector<1x256xi1> to vector<1x256xi1>
    %90 = vector.broadcast %89 : vector<1x256xi1> to vector<4x256xi1>
    %91 = vector.broadcast %cst_22 : f32 to vector<4x256xf32>
    %92 = arith.select %90, %86, %91 : vector<4x256xi1>, vector<4x256xf32>
    %93 = vector.extract_strided_slice %7 {offsets = [0, 7], sizes = [4, 1], strides = [1, 1]} : vector<4x9xf32> to vector<4x1xf32>
    %94 = vector.broadcast %93 : vector<4x1xf32> to vector<4x256xf32>
    %95 = arith.mulf %92, %94 : vector<4x256xf32>
    %96 = arith.addf %85, %95 : vector<4x256xf32>
    %c239_i32 = arith.constant 239 : i32
    %97 = tpu.dynamic_rotate %6 by %c239_i32 dim 1 : vector<4x256xf32>, i32 -> vector<4x256xf32>
    %c14_i32_23 = arith.constant 14 : i32
    %98 = vector.broadcast %c14_i32_23 : i32 to vector<1x256xi32>
    %99 = arith.cmpi sle, %3, %98 : vector<1x256xi32>
    %c14_i32_24 = arith.constant 14 : i32
    %100 = vector.broadcast %c14_i32_24 : i32 to vector<1x256xi32>
    %101 = arith.cmpi sle, %4, %100 : vector<1x256xi32>
    %102 = arith.andi %99, %101 : vector<1x256xi1>
    %cst_25 = arith.constant 0.000000e+00 : f32
    %103 = vector.shape_cast %102 : vector<1x256xi1> to vector<1x256xi1>
    %104 = vector.broadcast %103 : vector<1x256xi1> to vector<4x256xi1>
    %105 = vector.broadcast %cst_25 : f32 to vector<4x256xf32>
    %106 = arith.select %104, %97, %105 : vector<4x256xi1>, vector<4x256xf32>
    %107 = vector.extract_strided_slice %7 {offsets = [0, 8], sizes = [4, 1], strides = [1, 1]} : vector<4x9xf32> to vector<4x1xf32>
    %108 = vector.broadcast %107 : vector<4x1xf32> to vector<4x256xf32>
    %109 = arith.mulf %106, %108 : vector<4x256xf32>
    %110 = arith.addf %96, %109 : vector<4x256xf32>
    %111 = arith.index_cast %arg0 : i32 to index
    %c0_26 = arith.constant 0 : index
    %c0_27 = arith.constant 0 : index
    %112 = vector.load %arg8[%111, %c0_26, %c0_27] : memref<2x4x256xf32, #tpu.memory_space<vmem>>, vector<1x4x256xf32>
    %113 = vector.shape_cast %112 : vector<1x4x256xf32> to vector<4x256xf32>
    %114 = vector.shape_cast %110 : vector<4x256xf32> to vector<1x4x256xf32>
    tpu.vector_store %arg8[%111, %c0_26, %c0_27], %114 {strides = array<i32>} : memref<2x4x256xf32, #tpu.memory_space<vmem>>, vector<1x4x256xf32>,
    %c0_28 = arith.constant 0 : index
    %c0_29 = arith.constant 0 : index
    %115 = vector.load %arg9[%c0_28, %c0_29] : memref<4x1xf32, #tpu.memory_space<vmem>>, vector<4x1xf32>
    %cst_30 = arith.constant dense<0.000000e+00> : vector<4xf32>
    %116 = vector.multi_reduction <add>, %110, %cst_30 [1] : vector<4x256xf32> to vector<4xf32>
    %117 = vector.shape_cast %116 : vector<4xf32> to vector<4x1xf32>
    %118 = arith.addf %115, %117 : vector<4x1xf32>
    %c0_31 = arith.constant 0 : index
    %c0_32 = arith.constant 0 : index
    %119 = vector.load %arg9[%c0_31, %c0_32] : memref<4x1xf32, #tpu.memory_space<vmem>>, vector<4x1xf32>
    tpu.vector_store %arg9[%c0_31, %c0_32], %118 {strides = array<i32>} : memref<4x1xf32, #tpu.memory_space<vmem>>, vector<4x1xf32>,
    %c1_i32_33 = arith.constant 1 : i32
    %120 = arith.cmpi eq, %arg0, %c1_i32_33 : i32
    %121 = arith.extui %120 : i1 to i32
    %c0_i32_34 = arith.constant 0 : i32
    %122 = arith.cmpi ne, %121, %c0_i32_34 : i32
    scf.if %122 {
      %c0_35 = arith.constant 0 : index
      %c0_36 = arith.constant 0 : index
      %123 = vector.load %arg9[%c0_35, %c0_36] : memref<4x1xf32, #tpu.memory_space<vmem>>, vector<4x1xf32>
      %cst_37 = arith.constant 0.001953125 : f32
      %124 = vector.broadcast %cst_37 : f32 to vector<4x1xf32>
      %125 = arith.mulf %123, %124 : vector<4x1xf32>
      %cst_38 = arith.constant 0.000000e+00 : f32
      %126 = vector.broadcast %cst_38 : f32 to vector<4x1xf32>
      %c0_39 = arith.constant 0 : index
      %c0_40 = arith.constant 0 : index
      %c0_41 = arith.constant 0 : index
      %127 = vector.load %arg8[%c0_39, %c0_40, %c0_41] : memref<2x4x256xf32, #tpu.memory_space<vmem>>, vector<1x4x256xf32>
      %128 = vector.shape_cast %127 : vector<1x4x256xf32> to vector<4x256xf32>
      %129 = vector.broadcast %125 : vector<4x1xf32> to vector<4x256xf32>
      %130 = arith.subf %128, %129 : vector<4x256xf32>
      %131 = arith.mulf %130, %130 : vector<4x256xf32>
      %cst_42 = arith.constant dense<0.000000e+00> : vector<4xf32>
      %132 = vector.multi_reduction <add>, %131, %cst_42 [1] : vector<4x256xf32> to vector<4xf32>
      %133 = vector.shape_cast %132 : vector<4xf32> to vector<4x1xf32>
      %134 = arith.addf %126, %133 : vector<4x1xf32>
      %c1_43 = arith.constant 1 : index
      %c0_44 = arith.constant 0 : index
      %c0_45 = arith.constant 0 : index
      %135 = vector.load %arg8[%c1_43, %c0_44, %c0_45] : memref<2x4x256xf32, #tpu.memory_space<vmem>>, vector<1x4x256xf32>
      %136 = vector.shape_cast %135 : vector<1x4x256xf32> to vector<4x256xf32>
      %137 = vector.broadcast %125 : vector<4x1xf32> to vector<4x256xf32>
      %138 = arith.subf %136, %137 : vector<4x256xf32>
      %139 = arith.mulf %138, %138 : vector<4x256xf32>
      %cst_46 = arith.constant dense<0.000000e+00> : vector<4xf32>
      %140 = vector.multi_reduction <add>, %139, %cst_46 [1] : vector<4x256xf32> to vector<4xf32>
      %141 = vector.shape_cast %140 : vector<4xf32> to vector<4x1xf32>
      %142 = arith.addf %134, %141 : vector<4x1xf32>
      %cst_47 = arith.constant 0.001953125 : f32
      %143 = vector.broadcast %cst_47 : f32 to vector<4x1xf32>
      %144 = arith.mulf %142, %143 : vector<4x1xf32>
      %c0_48 = arith.constant 0 : index
      %c0_49 = arith.constant 0 : index
      %145 = vector.load %arg4[%c0_48, %c0_49] : memref<4x1xf32, #tpu.memory_space<vmem>>, vector<4x1xf32>
      %cst_50 = arith.constant 9.99999974E-6 : f32
      %146 = vector.broadcast %cst_50 : f32 to vector<4x1xf32>
      %147 = arith.addf %144, %146 : vector<4x1xf32>
      %148 = math.rsqrt %147 : vector<4x1xf32>
      %149 = arith.mulf %145, %148 : vector<4x1xf32>
      %c0_51 = arith.constant 0 : index
      %c0_52 = arith.constant 0 : index
      %150 = vector.load %arg5[%c0_51, %c0_52] : memref<4x1xf32, #tpu.memory_space<vmem>>, vector<4x1xf32>
      %151 = arith.mulf %125, %149 : vector<4x1xf32>
      %152 = arith.subf %150, %151 : vector<4x1xf32>
      %c0_53 = arith.constant 0 : index
      %c0_54 = arith.constant 0 : index
      %153 = vector.load %arg3[%c0_53, %c0_54] : memref<8x4xf32, #tpu.memory_space<vmem>>, vector<8x4xf32>
      %c0_55 = arith.constant 0 : index
      %c0_56 = arith.constant 0 : index
      %c0_57 = arith.constant 0 : index
      %154 = vector.load %arg8[%c0_55, %c0_56, %c0_57] : memref<2x4x256xf32, #tpu.memory_space<vmem>>, vector<1x4x256xf32>
      %155 = vector.shape_cast %154 : vector<1x4x256xf32> to vector<4x256xf32>
      %156 = vector.broadcast %149 : vector<4x1xf32> to vector<4x256xf32>
      %157 = arith.mulf %155, %156 : vector<4x256xf32>
      %158 = vector.broadcast %152 : vector<4x1xf32> to vector<4x256xf32>
      %159 = arith.addf %157, %158 : vector<4x256xf32>
      %160 = vector.extract_strided_slice %153 {offsets = [0, 0], sizes = [8, 1], strides = [1, 1]} : vector<8x4xf32> to vector<8x1xf32>
      %161 = vector.extract_strided_slice %159 {offsets = [0, 0], sizes = [1, 256], strides = [1, 1]} : vector<4x256xf32> to vector<1x256xf32>
      %162 = vector.broadcast %160 : vector<8x1xf32> to vector<8x256xf32>
      %163 = vector.broadcast %161 : vector<1x256xf32> to vector<8x256xf32>
      %164 = arith.mulf %162, %163 : vector<8x256xf32>
      %165 = vector.extract_strided_slice %153 {offsets = [0, 1], sizes = [8, 1], strides = [1, 1]} : vector<8x4xf32> to vector<8x1xf32>
      %166 = vector.extract_strided_slice %159 {offsets = [1, 0], sizes = [1, 256], strides = [1, 1]} : vector<4x256xf32> to vector<1x256xf32>
      %167 = vector.broadcast %165 : vector<8x1xf32> to vector<8x256xf32>
      %168 = vector.broadcast %166 : vector<1x256xf32> to vector<8x256xf32>
      %169 = arith.mulf %167, %168 : vector<8x256xf32>
      %170 = arith.addf %164, %169 : vector<8x256xf32>
      %171 = vector.extract_strided_slice %153 {offsets = [0, 2], sizes = [8, 1], strides = [1, 1]} : vector<8x4xf32> to vector<8x1xf32>
      %172 = vector.extract_strided_slice %159 {offsets = [2, 0], sizes = [1, 256], strides = [1, 1]} : vector<4x256xf32> to vector<1x256xf32>
      %173 = vector.broadcast %171 : vector<8x1xf32> to vector<8x256xf32>
      %174 = vector.broadcast %172 : vector<1x256xf32> to vector<8x256xf32>
      %175 = arith.mulf %173, %174 : vector<8x256xf32>
      %176 = arith.addf %170, %175 : vector<8x256xf32>
      %177 = vector.extract_strided_slice %153 {offsets = [0, 3], sizes = [8, 1], strides = [1, 1]} : vector<8x4xf32> to vector<8x1xf32>
      %178 = vector.extract_strided_slice %159 {offsets = [3, 0], sizes = [1, 256], strides = [1, 1]} : vector<4x256xf32> to vector<1x256xf32>
      %179 = vector.broadcast %177 : vector<8x1xf32> to vector<8x256xf32>
      %180 = vector.broadcast %178 : vector<1x256xf32> to vector<8x256xf32>
      %181 = arith.mulf %179, %180 : vector<8x256xf32>
      %182 = arith.addf %176, %181 : vector<8x256xf32>
      %c0_58 = arith.constant 0 : index
      %c0_59 = arith.constant 0 : index
      %c0_60 = arith.constant 0 : index
      %183 = vector.load %arg7[%c0_58, %c0_59, %c0_60] : memref<2x8x256xf32, #tpu.memory_space<vmem>>, vector<1x8x256xf32>
      %184 = vector.shape_cast %183 : vector<1x8x256xf32> to vector<8x256xf32>
      %185 = vector.shape_cast %182 : vector<8x256xf32> to vector<1x8x256xf32>
      tpu.vector_store %arg7[%c0_58, %c0_59, %c0_60], %185 {strides = array<i32>} : memref<2x8x256xf32, #tpu.memory_space<vmem>>, vector<1x8x256xf32>,
      %c1_61 = arith.constant 1 : index
      %c0_62 = arith.constant 0 : index
      %c0_63 = arith.constant 0 : index
      %186 = vector.load %arg8[%c1_61, %c0_62, %c0_63] : memref<2x4x256xf32, #tpu.memory_space<vmem>>, vector<1x4x256xf32>
      %187 = vector.shape_cast %186 : vector<1x4x256xf32> to vector<4x256xf32>
      %188 = vector.broadcast %149 : vector<4x1xf32> to vector<4x256xf32>
      %189 = arith.mulf %187, %188 : vector<4x256xf32>
      %190 = vector.broadcast %152 : vector<4x1xf32> to vector<4x256xf32>
      %191 = arith.addf %189, %190 : vector<4x256xf32>
      %192 = vector.extract_strided_slice %153 {offsets = [0, 0], sizes = [8, 1], strides = [1, 1]} : vector<8x4xf32> to vector<8x1xf32>
      %193 = vector.extract_strided_slice %191 {offsets = [0, 0], sizes = [1, 256], strides = [1, 1]} : vector<4x256xf32> to vector<1x256xf32>
      %194 = vector.broadcast %192 : vector<8x1xf32> to vector<8x256xf32>
      %195 = vector.broadcast %193 : vector<1x256xf32> to vector<8x256xf32>
      %196 = arith.mulf %194, %195 : vector<8x256xf32>
      %197 = vector.extract_strided_slice %153 {offsets = [0, 1], sizes = [8, 1], strides = [1, 1]} : vector<8x4xf32> to vector<8x1xf32>
      %198 = vector.extract_strided_slice %191 {offsets = [1, 0], sizes = [1, 256], strides = [1, 1]} : vector<4x256xf32> to vector<1x256xf32>
      %199 = vector.broadcast %197 : vector<8x1xf32> to vector<8x256xf32>
      %200 = vector.broadcast %198 : vector<1x256xf32> to vector<8x256xf32>
      %201 = arith.mulf %199, %200 : vector<8x256xf32>
      %202 = arith.addf %196, %201 : vector<8x256xf32>
      %203 = vector.extract_strided_slice %153 {offsets = [0, 2], sizes = [8, 1], strides = [1, 1]} : vector<8x4xf32> to vector<8x1xf32>
      %204 = vector.extract_strided_slice %191 {offsets = [2, 0], sizes = [1, 256], strides = [1, 1]} : vector<4x256xf32> to vector<1x256xf32>
      %205 = vector.broadcast %203 : vector<8x1xf32> to vector<8x256xf32>
      %206 = vector.broadcast %204 : vector<1x256xf32> to vector<8x256xf32>
      %207 = arith.mulf %205, %206 : vector<8x256xf32>
      %208 = arith.addf %202, %207 : vector<8x256xf32>
      %209 = vector.extract_strided_slice %153 {offsets = [0, 3], sizes = [8, 1], strides = [1, 1]} : vector<8x4xf32> to vector<8x1xf32>
      %210 = vector.extract_strided_slice %191 {offsets = [3, 0], sizes = [1, 256], strides = [1, 1]} : vector<4x256xf32> to vector<1x256xf32>
      %211 = vector.broadcast %209 : vector<8x1xf32> to vector<8x256xf32>
      %212 = vector.broadcast %210 : vector<1x256xf32> to vector<8x256xf32>
      %213 = arith.mulf %211, %212 : vector<8x256xf32>
      %214 = arith.addf %208, %213 : vector<8x256xf32>
      %c1_64 = arith.constant 1 : index
      %c0_65 = arith.constant 0 : index
      %c0_66 = arith.constant 0 : index
      %215 = vector.load %arg7[%c1_64, %c0_65, %c0_66] : memref<2x8x256xf32, #tpu.memory_space<vmem>>, vector<1x8x256xf32>
      %216 = vector.shape_cast %215 : vector<1x8x256xf32> to vector<8x256xf32>
      %217 = vector.shape_cast %214 : vector<8x256xf32> to vector<1x8x256xf32>
      tpu.vector_store %arg7[%c1_64, %c0_65, %c0_66], %217 {strides = array<i32>} : memref<2x8x256xf32, #tpu.memory_space<vmem>>, vector<1x8x256xf32>,
    } else {
    }
    return
  }
  func.func @transform_0(%arg0: i32) -> (i32, i32) {
    %c0_i32 = arith.constant 0 : i32
    %c0_i32_0 = arith.constant 0 : i32
    %c0_i32_1 = arith.constant 0 : i32
    return %c0_i32, %c0_i32_0 : i32, i32
  }
  func.func @transform_1(%arg0: i32) -> (i32, i32) {
    %c0_i32 = arith.constant 0 : i32
    %c0_i32_0 = arith.constant 0 : i32
    %c0_i32_1 = arith.constant 0 : i32
    return %c0_i32, %c0_i32_0 : i32, i32
  }
  func.func @transform_2(%arg0: i32) -> (i32, i32) {
    %c0_i32 = arith.constant 0 : i32
    %c0_i32_0 = arith.constant 0 : i32
    %c0_i32_1 = arith.constant 0 : i32
    return %c0_i32, %c0_i32_0 : i32, i32
  }
  func.func @transform_3(%arg0: i32) -> (i32, i32) {
    %c0_i32 = arith.constant 0 : i32
    %c0_i32_0 = arith.constant 0 : i32
    %c0_i32_1 = arith.constant 0 : i32
    return %c0_i32, %c0_i32_0 : i32, i32
  }
  func.func @transform_4(%arg0: i32) -> (i32, i32) {
    %c0_i32 = arith.constant 0 : i32
    %c0_i32_0 = arith.constant 0 : i32
    %c0_i32_1 = arith.constant 0 : i32
    return %c0_i32, %c0_i32_0 : i32, i32
  }
  func.func @transform_5(%arg0: i32) -> (i32, i32, i32) {
    %c0_i32 = arith.constant 0 : i32
    %c0_i32_0 = arith.constant 0 : i32
    %c0_i32_1 = arith.constant 0 : i32
    return %arg0, %c0_i32, %c0_i32_0 : i32, i32, i32
  }
  func.func @transform_6(%arg0: i32) -> (i32, i32, i32) {
    %c0_i32 = arith.constant 0 : i32
    %c0_i32_0 = arith.constant 0 : i32
    %c0_i32_1 = arith.constant 0 : i32
    %c0_i32_2 = arith.constant 0 : i32
    return %c0_i32, %c0_i32_0, %c0_i32_1 : i32, i32, i32
  }
}

</mosaic_0001>

<bundles_post_ra>
// kernel: tpu_custom_call.1
= control target key start
LH: loop header
LB: loop body
LE: loop exit
PB: predicated region body
PF: predicated region fallthrough
CT: control target
= control target key end

     0   :  { %11 = vsyncpa [#allocation5], 0  ;;  %s1451_s0 = inlined_call_operand.hbm [shape: s32[2,256], index: 0, kind: input, shape index: {}]   ;;  %s1452_s1 = inlined_call_operand.hbm [shape: f32[4,9], index: 1, kind: input, shape index: {}]   ;;  %s1453_s2 = inlined_call_operand.vmem [shape: f32[8,4], index: 2, kind: input, shape index: {}]   ;;  %s1454_s3 = inlined_call_operand.vmem [shape: f32[4,1], index: 3, kind: input, shape index: {}]   ;;  %s1455_s4 = inlined_call_operand.vmem [shape: f32[4,1], index: 4, kind: input, shape index: {}]   ;;  %s1456_s5 = inlined_call_operand.vmem [shape: f32[2,4,256], index: 5, kind: input, shape index: {}]   ;;  %s1457_s6 = inlined_call_operand.hbm [shape: f32[2,8,256], index: 6, kind: output, shape index: {}]  }
   0x1   :  { %12 = vsyncpa [#allocation8], 0 }
   0x2   :  { %13 = vsyncpa [#allocation6], 0  ;;  %s1099_s21 = smov 0  }
   0x3 LB: > { %s188_s24 = sshll.u32 %s1451_s0, 4  ;;  %s1108_s25 = sadd.s32 4294967295, %s1035_s21   ;;  %s1035_s21 = sphi %s1099_s21, %s19_s21   ;;  %s189_s24 = int_to_ptr.hbm [resolvable:$true] %s188_s24 }
   0x4   : > { %p830_p0 = scmp.ge.s32.totalorder %s1035_s21, 1  ;;  %p176_p1 = scmp.lt.s32.totalorder %s1035_s21, 3 }
   0x5   : > { %p831_p2 = scmp.ne.s32.totalorder %s1108_s25, 0  ;;  %p868_p3 = scmp.eq.s32.totalorder %s1108_s25, 0 }
   0x6   : > { %p1114_p4 = pnand %p830_p0, %p176_p1  ;;  %s1037_s27 = smov [#allocation4]  }
   0x7   : > { %s190_s28 = sshll.u32 %s1037_s27, 4  ;;  %s200_s7 = sshll.u32 %s1452_s1, 4  ;;  %s191_s28 = int_to_ptr.vmem [resolvable:$true] %s190_s28  ;;  %s201_s7 = int_to_ptr.hbm [resolvable:$true] %s200_s7 }
   0x8   : > { %p861_p5 = pneg %p1114_p4  ;;  %s1038_s8 = smov [#allocation7]  }
   0x9   : > { %s202_s9 = sshll.u32 %s1038_s8, 4  ;;  %232 = sbr.rel (%p1114_p4) target bundleno = 787 (0x313), region = 44  ;;  %s203_s9 = int_to_ptr.vmem [resolvable:$true] %s202_s9 }
   0xa   : > { %p862_p6 = pnand %p868_p3, %p861_p5 }
   0xc   : > { %864 = dma.hbm_to_vmem [thread:$0]  (!%p862_p6), %s189_s24, 64, %s191_s28, [#allocation5]  }
   0xd   : > { %867 = dma.hbm_to_vmem [thread:$0]  (!%p862_p6), %s201_s7, 64, %s203_s9, [#allocation8]  }
   0xe   : > { %1022 = dma.done.wait (%p868_p3), [#allocation5], 64  }
   0xf   : > { %1024 = vsyncadd (%p868_p3), [#allocation5], 4294967232 }
  0x10   : > { %1026 = dma.done.wait (%p868_p3), [#allocation8], 64  }
  0x11   : > { %1028 = vsyncadd (%p868_p3), [#allocation8], 4294967232  ;;  %p263_p7 = scmp.lt.s32.totalorder %s1108_s25, 1 }
  0x12   : > { %271 = sbr.rel (%p831_p2) target bundleno = 25 (0x19), region = 56 }
  0x13   : > { %s264_s10 = scalar_select %p263_p7, %s1108_s25, 1 }
  0x15   : > { %s847_s11 = sshll.u32 %s264_s10, 3 }
  0x16   : > { %s267_s14 = scalar_lea.vmem %s1456_s5, %s847_s11 }
  0x17   : > { %vm272_vm0 = vcmask 3072   ;;  %v1039_v0 = vmov 0.0  }
  0x18   : > { %273 = vst.msk [vmem:[#allocation3] sm:$0xf] %vm272_vm0, %v1039_v0 }
  0x19 PF: > { %v1142_v1 = vld [vmem:[#allocation7] sm:$0xf]  ;;  %v1040_v3 = vmov 0   ;;  %v1041_v4 = vmov 1   ;;  %v1042_v5 = vmov 4   ;;  %s1043_s15 = smov 17   ;;  %v299_v41 = vlaneseq }
  0x1a   : > { %v1144_v2 = vld [vmem:[%s267_s14] sm:$0xff]  ;;  %909 = vset.pattern.permute.xlu1 %v1040_v3  ;;  %911 = vset.pattern.permute.xlu0 %v1041_v4  ;;  %v1044_v8 = vmov 2   ;;  %s1045_s16 = smov 16   ;;  %v1046_v11 = vmov 3   ;;  %s1047_s17 = smov 15   ;;  %v1049_v16 = vmov 8  }
  0x1b   : > { %290 = vst [vmem:[#allocation1] ss:$2 sm:$0xff] %v1144_v2  ;;  %315 = vperm.xlu1 %909, %v1142_v1   ;;  %910 = vset.pattern.permute.xlu2 %v1042_v5  ;;  %s1048_s18 = smov 1   ;;  %s1050_s19 = smov 127   ;;  %v1051_v19 = vmov 5   ;;  %v1053_v22 = vmov 6  }
  0x1c   : > { %281 = vperm.xlu2 %910, %v1142_v1   ;;  %s1052_s20 = smov 113   ;;  %s1054_s22 = smov 112   ;;  %v1055_v25 = vmov 7   ;;  %v1180_v38 = vld [vmem:[#allocation4] ss:$2 sm:$0x3] }
  0x1d   : > { %s1056_s23 = smov 111   ;;  %v1182_v39 = vld [vmem:[#allocation4 + $0x1] ss:$2 sm:$0x3]  ;;  %vm304_vm1 = vcmp.ge.s32.totalorder %v1180_v38, 1  ;;  %v1197_v46 = vand.u32 127, %v299_v41 }
  0x1e   : > { %vm305_vm2 = vcmp.ge.s32.totalorder %v1182_v39, 1  ;;  %v1057_v42 = vmov 839922192   ;;  %vm370_vm4 = vcmp.le.s32.totalorder %v1182_v39, 14  ;;  %v339_v51 = vsel %vm304_vm1, 1, %v1040_v3  ;;  %s848_s24 = sshll.u32 %s1108_s25, 3 }
  0x1f   : > { %vm306_vm3 = vmand %vm304_vm1, %vm305_vm2  ;;  %v284_v43 = vunpack.c.l.s4 %v1057_v42  ;;  %vm301_vm6 = vcmp.lt.s32.totalorder %v1197_v46, 17  ;;  %vm465_vm8 = vcmp.le.s32.totalorder %v1180_v38, 14  ;;  %v340_v58 = vperm.slane %v339_v51, 0  ;;  %s551_s26 = scalar_lea.vmem [#allocation2], %s848_s24  ;;  %p842_p8 = scmp.ne.s32.totalorder %s1108_s25, 1 }
  0x20   : > { %v307_v47 = vsel %vm306_vm3, 1, %v1040_v3  ;;  %vm371_vm5 = vmand %vm304_vm1, %vm370_vm4  ;;  %v341_v59 = vperm.slane %v339_v51, 1  ;;  %v403_v61 = vsel %vm305_vm2, 1, %v1040_v3  ;;  %vm323_vm9 = vcmask 1043456  }
  0x21   : > { %v1202_v49 = vunpack.c.0.s8 %v284_v43  ;;  %v309_v50 = vperm.slane %v307_v47, 1  ;;  %v372_v52 = vsel %vm371_vm5, 1, %v1040_v3  ;;  %v308_v56 = vperm.slane %v307_v47, 0  ;;  %vm466_vm11 = vmand %vm465_vm8, %vm305_vm2 }
  0x22   : > { %v291_v6 = vld.sshfl [vmem:[#allocation1] sm:$0xff pattern:$0x75316420]  ;;  %v292_v7 = vld.sshfl [vmem:[#allocation1 + $0x8] sm:$0xff pattern:$0x75316420] }
  0x23   : > { %295 = vrot.lane.b32.xlu0 %v291_v6, %s1043_s15  ;;  %327 = vst [vmem:[#allocation1] ss:$2 sm:$0xff] %v1144_v2  ;;  %912 = vset.pattern.permute.xlu1 %v1044_v8  ;;  %vm1218_vm7 = vcmp.eq.s32.totalorder %v309_v50, 1  ;;  %v374_v60 = vperm.slane %v372_v52, 1  ;;  %vm336_vm10 = vcmp.lt.s32.totalorder %v1197_v46, 16  ;;  %v434_v4 = vsel %vm370_vm4, 1, %v1040_v3 }
  0x24   : > { %380 = vperm.xlu1 %912, %v1142_v1   ;;  %vm367_vm12 = vcmp.lt.s32.totalorder %v1197_v46, 15  ;;  %v373_v5 = vperm.slane %v372_v52, 0  ;;  %v405_v6 = vperm.slane %v403_v61, 1  ;;  %vm1244_vm13 = vcmp.eq.s32.totalorder %v308_v56, 1 }
  0x25   : > { %vm1248_vm14 = vcmp.eq.s32.totalorder %v340_v58, 1  ;;  %vm1252_vm15 = vcmp.eq.s32.totalorder %v341_v59, 1  ;;  %vm1256_vm0 = vcmp.eq.s32.totalorder %v374_v60, 1  ;;  %vm400_vm1 = vcmp.lt.s32.totalorder %v1197_v46, 1 }
  0x26   : > { %vm1273_vm2 = vcmp.eq.s32.totalorder %v373_v5, 1  ;;  %vm1281_vm5 = vcmp.eq.s32.totalorder %v405_v6, 1 }
  0x2a   : > { %v328_v9 = vld.sshfl [vmem:[#allocation1] sm:$0xff pattern:$0x75316420]  ;;  %v329_v10 = vld.sshfl [vmem:[#allocation1 + $0x8] sm:$0xff pattern:$0x75316420] }
  0x2b   : > { %297 = vrot.lane.b32.xlu0 %v292_v7, %s1043_s15  ;;  %358 = vst [vmem:[#allocation1] ss:$2 sm:$0xff] %v1144_v2  ;;  %334 = vrot.lane.b32.xlu2 %v329_v10, %s1045_s16 }
  0x2c   : > { %332 = vrot.lane.b32.xlu1 %v328_v9, %s1045_s16 }
  0x2d   : > { %913 = vset.pattern.permute.xlu1 %v1046_v11 }
  0x32   : > { %v359_v12 = vld.sshfl [vmem:[#allocation1] sm:$0xff pattern:$0x75316420]  ;;  %v360_v13 = vld.sshfl [vmem:[#allocation1 + $0x8] sm:$0xff pattern:$0x75316420] }
  0x33   : > { %347 = vperm.xlu0 %911, %v1142_v1   ;;  %391 = vst [vmem:[#allocation1] ss:$2 sm:$0xff] %v1144_v2  ;;  %365 = vrot.lane.b32.xlu2 %v360_v13, %s1047_s17  ;;  %v435_v13 = vperm.slane %v434_v4, 0 }
  0x34   : > { %363 = vrot.lane.b32.xlu1 %v359_v12, %s1047_s17 }
  0x3a   : > { %v393_v14 = vld.sshfl [vmem:[#allocation1 + $0x8] sm:$0xff pattern:$0x75316420]  ;;  %v392_v15 = vld.sshfl [vmem:[#allocation1] sm:$0xff pattern:$0x75316420] }
  0x3b   : > { %398 = vrot.lane.b32.xlu0 %v393_v14, %s1048_s18  ;;  %422 = vst [vmem:[#allocation1] ss:$2 sm:$0xff] %v1144_v2  ;;  %396 = vrot.lane.b32.xlu2 %v392_v15, %s1048_s18  ;;  %v467_v14 = vsel %vm466_vm11, 1, %v1040_v3  ;;  %vm462_vm11 = vcmp.lt.s32.totalorder %v1197_v46, 113 }
  0x3c   : > { %918 = vset.pattern.permute.xlu0 %v1049_v16  ;;  %411 = vperm.xlu1 %913, %v1142_v1   ;;  %v468_v52 = vperm.slane %v467_v14, 0 }
  0x42   : > { %v423_v17 = vld.sshfl [vmem:[#allocation1] sm:$0xff pattern:$0x75316420]  ;;  %v424_v18 = vld.sshfl [vmem:[#allocation1 + $0x8] sm:$0xff pattern:$0x75316420] }
  0x43   : > { %429 = vrot.lane.b32.xlu0 %v424_v18, %s1050_s19  ;;  %453 = vst [vmem:[#allocation1] ss:$2 sm:$0xff] %v1144_v2  ;;  %427 = vrot.lane.b32.xlu2 %v423_v17, %s1050_s19  ;;  %v436_v17 = vperm.slane %v434_v4, 1 }
  0x44   : > { %914 = vset.pattern.permute.xlu1 %v1051_v19 }
  0x45   : > { %442 = vperm.xlu1 %914, %v1142_v1  }
  0x4a   : > { %v455_v20 = vld.sshfl [vmem:[#allocation1 + $0x8] sm:$0xff pattern:$0x75316420]  ;;  %v454_v21 = vld.sshfl [vmem:[#allocation1] sm:$0xff pattern:$0x75316420] }
  0x4b   : > { %460 = vrot.lane.b32.xlu0 %v455_v20, %s1052_s20  ;;  %486 = vst [vmem:[#allocation1] ss:$2 sm:$0xff] %v1144_v2  ;;  %458 = vrot.lane.b32.xlu2 %v454_v21, %s1052_s20 }
  0x4d   : > { %915 = vset.pattern.permute.xlu1 %v1053_v22  ;;  %v498_v22 = vsel %vm465_vm8, 1, %v1040_v3 }
  0x4e   : > { %475 = vperm.xlu1 %915, %v1142_v1   ;;  %v500_v43 = vperm.slane %v498_v22, 1  ;;  %v499_v57 = vperm.slane %v498_v22, 0 }
  0x52   : > { %v488_v23 = vld.sshfl [vmem:[#allocation1 + $0x8] sm:$0xff pattern:$0x75316420]  ;;  %v487_v24 = vld.sshfl [vmem:[#allocation1] sm:$0xff pattern:$0x75316420] }
  0x53   : > { %493 = vrot.lane.b32.xlu0 %v488_v23, %s1054_s22  ;;  %517 = vst [vmem:[#allocation1] ss:$2 sm:$0xff] %v1144_v2  ;;  %491 = vrot.lane.b32.xlu2 %v487_v24, %s1054_s22 }
  0x56   : > { %916 = vset.pattern.permute.xlu1 %v1055_v25  ;;  %v469_v25 = vperm.slane %v467_v14, 1 }
  0x57   : > { %506 = vperm.xlu1 %916, %v1142_v1  }
  0x5a   : > { %v519_v26 = vld.sshfl [vmem:[#allocation1 + $0x8] sm:$0xff pattern:$0x75316420]  ;;  %v518_v27 = vld.sshfl [vmem:[#allocation1] sm:$0xff pattern:$0x75316420] }
  0x5b   : > { %524 = vrot.lane.b32.xlu0 %v519_v26, %s1056_s23  ;;  %522 = vrot.lane.b32.xlu2 %v518_v27, %s1056_s23 }
  0x5f   : > { %917 = vset.pattern.permute.xlu1 %v1049_v16 }
  0x60   : > { %538 = vperm.xlu1 %917, %v1142_v1  }
  0x76   : > { %v282_v28 = vpop.permute.xlu2 %281 }
  0x77   : > { %v286_v53 = vperm.slane %v282_v28, %v1202_v49 }
  0x79   : > { %v1231_v0 = vmul.f32 %v286_v53, %v1144_v2  ;;  %v404_v2 = vperm.slane %v403_v61, 0 }
  0x7b   : > { %vm1277_vm3 = vcmp.eq.s32.totalorder %v404_v2, 1 }
  0x85   : > { %v1168_v30 = vpop.permute.xlu2 %334 }
  0x8d   : > { %v1166_v29 = vpop.permute.xlu1 %315  ;;  %v1172_v33 = vpop.permute.xlu2 %365 }
  0x95   : > { %v296_v31 = vpop.permute.xlu0 %295  ;;  %v1176_v36 = vpop.permute.xlu2 %396 }
  0x96   : > { %v1170_v32 = vpop.permute.xlu1 %380 }
  0x9d   : > { %v298_v34 = vpop.permute.xlu0 %297  ;;  %v1194_v45 = vpop.permute.xlu2 %427 }
  0x9e   : > { %v1174_v35 = vpop.permute.xlu1 %332  ;;  %v302_v55 = vsel %vm301_vm6, %v296_v31, %v298_v34  ;;  %v303_v11 = vsel %vm301_vm6, %v298_v34, %v296_v31  ;;  %vm431_vm6 = vcmp.lt.s32.totalorder %v1197_v46, 127 }
  0x9f   : > { %v313_v1 = vsel %vm1218_vm7, %v302_v55, 0.0  ;;  %v337_v15 = vsel %vm336_vm10, %v1174_v35, %v1168_v30  ;;  %v312_v23 = vsel %vm1244_vm13, %v303_v11, 0.0  ;;  %v338_v24 = vsel %vm336_vm10, %v1168_v30, %v1174_v35 }
  0xa0   : > { %v319_v12 = vmul.f32 %v1166_v29, %v313_v1  ;;  %v345_v27 = vsel %vm1252_vm15, %v337_v15, 0.0  ;;  %vm1303_vm7 = vcmp.eq.s32.totalorder %v435_v13, 1  ;;  %vm1308_vm10 = vcmp.eq.s32.totalorder %v436_v17, 1 }
  0xa1   : > { %v318_v47 = vmul.f32 %v1166_v29, %v312_v23  ;;  %v344_v53 = vsel %vm1248_vm14, %v338_v24, 0.0  ;;  %vm495_vm13 = vcmp.lt.s32.totalorder %v1197_v46, 112  ;;  %vm1338_vm15 = vcmp.eq.s32.totalorder %v469_v25, 1 }
  0xa2   : > { %v322_v26 = vrot.slane %v319_v12, 4  ;;  %vm1371_vm14 = vcmp.eq.s32.totalorder %v499_v57, 1 }
  0xa4   : > { %v324_v29 = vsel %vm323_vm9, %v318_v47, %v322_v26 }
  0xa5   : > { %v1178_v37 = vpop.permute.xlu0 %347  ;;  %v1226_v62 = vpop.permute.xlu2 %458  ;;  %v326_v2 = vadd.f32 %v324_v29, %v1231_v0 }
  0xa6   : > { %v1184_v40 = vpop.permute.xlu1 %363  ;;  %v351_v30 = vmul.f32 %v1178_v37, %v345_v27  ;;  %v350_v9 = vmul.f32 %v1178_v37, %v344_v53 }
  0xa7   : > { %v368_v16 = vsel %vm367_vm12, %v1184_v40, %v1172_v33  ;;  %v369_v50 = vsel %vm367_vm12, %v1172_v33, %v1184_v40  ;;  %vm529_vm12 = vmand %vm465_vm8, %vm370_vm4  ;;  %vm1346_vm4 = vcmp.eq.s32.totalorder %v500_v43, 1  ;;  %vm1359_vm8 = vcmp.eq.s32.totalorder %v468_v52, 1 }
  0xa8   : > { %v378_v28 = vsel %vm1256_vm0, %v368_v16, 0.0  ;;  %v354_v58 = vrot.slane %v351_v30, 4  ;;  %v377_v59 = vsel %vm1273_vm2, %v369_v50, 0.0  ;;  %v530_v5 = vsel %vm529_vm12, 1, %v1040_v3 }
  0xa9   : > { %v384_v55 = vmul.f32 %v1170_v32, %v378_v28  ;;  %v383_v0 = vmul.f32 %v1170_v32, %v377_v59  ;;  %v532_v37 = vperm.slane %v530_v5, 1  ;;  %vm526_vm0 = vcmp.lt.s32.totalorder %v1197_v46, 111 }
  0xaa   : > { %v355_v12 = vsel %vm323_vm9, %v350_v9, %v354_v58  ;;  %v531_v17 = vperm.slane %v530_v5, 0 }
  0xab   : > { %v387_v6 = vrot.slane %v384_v55, 4 }
  0xac   : > { %vm1404_vm2 = vcmp.eq.s32.totalorder %v531_v17, 1 }
  0xad   : > { %v1192_v44 = vpop.permute.xlu0 %398  ;;  %v492_v42 = vpop.permute.xlu2 %491  ;;  %v388_v15 = vsel %vm323_vm9, %v383_v0, %v387_v6 }
  0xae   : > { %v1200_v48 = vpop.permute.xlu1 %411  ;;  %v401_v31 = vsel %vm400_vm1, %v1176_v36, %v1192_v44  ;;  %v402_v61 = vsel %vm400_vm1, %v1192_v44, %v1176_v36  ;;  %vm1394_vm1 = vcmp.eq.s32.totalorder %v532_v37, 1 }
  0xaf   : > { %v409_v56 = vsel %vm1281_vm5, %v401_v31, 0.0  ;;  %v408_v10 = vsel %vm1277_vm3, %v402_v61, 0.0  ;;  %vm566_vm3 = vcmask 3072  }
  0xb0   : > { %v415_v1 = vmul.f32 %v1200_v48, %v409_v56  ;;  %v414_v19 = vmul.f32 %v1200_v48, %v408_v10 }
  0xb2   : > { %v418_v13 = vrot.slane %v415_v1, 4  ;;  %v553_v1 = vld [vmem:[#allocation3] sm:$0xf] }
  0xb4   : > { %v419_v25 = vsel %vm323_vm9, %v414_v19, %v418_v13 }
  0xb5   : > { %v1214_v54 = vpop.permute.xlu0 %429  ;;  %v523_v16 = vpop.permute.xlu2 %522 }
  0xb6   : > { %v433_v51 = vsel %vm431_vm6, %v1214_v54, %v1194_v45  ;;  %v432_v36 = vsel %vm431_vm6, %v1194_v45, %v1214_v54 }
  0xb7   : > { %v1228_v63 = vpop.permute.xlu1 %442  ;;  %v440_v39 = vsel %vm1308_vm10, %v433_v51, 0.0  ;;  %v439_v32 = vsel %vm1303_vm7, %v432_v36, 0.0 }
  0xb8   : > { %v446_v44 = vmul.f32 %v1228_v63, %v440_v39  ;;  %v445_v26 = vmul.f32 %v1228_v63, %v439_v32 }
  0xba   : > { %v449_v20 = vrot.slane %v446_v44, 4 }
  0xbc   : > { %v450_v30 = vsel %vm323_vm9, %v445_v26, %v449_v20 }
  0xbd   : > { %v461_v18 = vpop.permute.xlu0 %460 }
  0xbe   : > { %v464_v33 = vsel %vm462_vm11, %v461_v18, %v1226_v62  ;;  %v463_v45 = vsel %vm462_vm11, %v1226_v62, %v461_v18  ;;  %v357_v62 = vadd.f32 %v355_v12, %v326_v2 }
  0xbf   : > { %v473_v8 = vsel %vm1338_vm15, %v464_v33, 0.0  ;;  %v472_v18 = vsel %vm1359_vm8, %v463_v45, 0.0 }
  0xc0   : > { %v1313_v41 = vpop.permute.xlu1 %475  ;;  %v390_v28 = vadd.f32 %v388_v15, %v357_v62 }
  0xc1   : > { %v479_v54 = vmul.f32 %v1313_v41, %v473_v8  ;;  %v478_v35 = vmul.f32 %v1313_v41, %v472_v18 }
  0xc2   : > { %v421_v43 = vadd.f32 %v419_v25, %v390_v28 }
  0xc3   : > { %v482_v27 = vrot.slane %v479_v54, 4 }
  0xc4   : > { %v452_v52 = vadd.f32 %v450_v30, %v421_v43 }
  0xc5   : > { %v494_v38 = vpop.permute.xlu0 %493  ;;  %v483_v50 = vsel %vm323_vm9, %v478_v35, %v482_v27 }
  0xc6   : > { %v497_v4 = vsel %vm495_vm13, %v494_v38, %v492_v42  ;;  %v496_v21 = vsel %vm495_vm13, %v492_v42, %v494_v38  ;;  %v485_v41 = vadd.f32 %v483_v50, %v452_v52 }
  0xc7   : > { %v504_v11 = vsel %vm1346_vm4, %v497_v4, 0.0  ;;  %v503_v31 = vsel %vm1371_vm14, %v496_v21, 0.0 }
  0xc9   : > { %v507_v14 = vpop.permute.xlu1 %506 }
  0xca   : > { %v510_v22 = vmul.f32 %v507_v14, %v504_v11  ;;  %v509_v51 = vmul.f32 %v507_v14, %v503_v31 }
  0xcc   : > { %v513_v42 = vrot.slane %v510_v22, 4 }
  0xcd   : > { %v525_v23 = vpop.permute.xlu0 %524 }
  0xce   : > { %v528_v48 = vsel %vm526_vm0, %v525_v23, %v523_v16  ;;  %v527_v63 = vsel %vm526_vm0, %v523_v16, %v525_v23  ;;  %v514_v56 = vsel %vm323_vm9, %v509_v51, %v513_v42 }
  0xcf   : > { %v536_v47 = vsel %vm1394_vm1, %v528_v48, 0.0  ;;  %v535_v55 = vsel %vm1404_vm2, %v527_v63, 0.0  ;;  %v516_v40 = vadd.f32 %v514_v56, %v485_v41 }
  0xd2   : > { %v539_v53 = vpop.permute.xlu1 %538 }
  0xd3   : > { %v542_v29 = vmul.f32 %v539_v53, %v536_v47  ;;  %v541_v33 = vmul.f32 %v539_v53, %v535_v55 }
  0xd5   : > { %v545_v46 = vrot.slane %v542_v29, 4 }
  0xd7   : > { %v546_v57 = vsel %vm323_vm9, %v541_v33, %v545_v46 }
  0xd8   : > { %v548_v58 = vadd.f32 %v546_v57, %v516_v40 }
  0xda   : > { %552 = vst [vmem:[%s551_s26] sm:$0xff] %v548_v58 }
  0xdb   : > { %555 = vst [vmem:[#allocation1] ss:$2 sm:$0xff] %v548_v58 }
  0xe2   : > { %v556_v59 = vld.sshfl [vmem:[#allocation1] sm:$0xff pattern:$0x75316420]  ;;  %v557_v39 = vld.sshfl [vmem:[#allocation1 + $0x8] sm:$0xff pattern:$0x75316420] }
  0xe3   : > { %v560_v38 = vsel %vm323_vm9, %v556_v59, 0.0  ;;  %v561_v60 = vsel %vm323_vm9, %v557_v39, 0.0 }
  0xe4   : > { %v562_v61 = vadd.f32 %v561_v60, %v560_v38 }
  0xe6   : > { %563 = vadd.xlane.f32.xlu2 %v562_v61 }
 0x158   : > { %571 = sbr.rel (%p842_p8) target bundleno = 781 (0x30d), region = 60 }
 0x159   : > { %v564_v4 = vpop.xlane.xlu2 %563 }
 0x15a   : > { %v565_v5 = vadd.f32 %v564_v4, %v553_v1 }
 0x15c   : > { %567 = vst.msk [vmem:[#allocation3] sm:$0xf] %vm566_vm3, %v565_v5 }
 0x15d   : > { %v1058_v6 = vmov 0   ;;  %v1423_v8 = vld [vmem:[#allocation2] sm:$0xff]  ;;  %v599_v0 = vld [vmem:[#allocation2 + $0x8] sm:$0xff]  ;;  %v631_v19 = vld [vmem:[%s1453_s2] sm:$0xff]  ;;  %v1059_v20 = vmov 1   ;;  %v1060_v24 = vmov 3  }
 0x15e   : > { %919 = vset.pattern.permute.xlu0 %v1058_v6  ;;  %921 = vset.pattern.permute.xlu2 %v1058_v6  ;;  %v615_v31 = vld [vmem:[%s1454_s3] sm:$0xf]  ;;  %v1061_v47 = vmov 2  }
 0x15f   : > { %920 = vset.pattern.permute.xlu1 %v1058_v6  ;;  %654 = vperm.xlu2 %921, %v631_v19   ;;  %v628_v42 = vld [vmem:[%s1455_s4] sm:$0xf] }
 0x163   : > { %v572_v2 = vld [vmem:[#allocation3] sm:$0xf] }
 0x164   : > { %v573_v7 = vmul.f32 0.001953125, %v572_v2 }
 0x166   : > { %577 = vperm.xlu0 %919, %v573_v7  }
 0x167   : > { %922 = vset.pattern.permute.xlu2 %v1059_v20 }
 0x168   : > { %667 = vperm.xlu2 %922, %v631_v19  }
 0x16e   : > { %926 = vset.pattern.permute.xlu0 %v1060_v24 }
 0x170   : > { %923 = vset.pattern.permute.xlu2 %v1058_v6 }
 0x1b9   : > { %v655_v50 = vpop.permute.xlu2 %654 }
 0x1c2   : > { %v668_v51 = vpop.permute.xlu2 %667 }
 0x1d8   : > { %v578_v9 = vpop.permute.xlu0 %577 }
 0x1d9   : > { %v582_v36 = vperm.slane %v578_v9, %v1202_v49 }
 0x1db   : > { %v584_v44 = vsub.f32 %v1423_v8, %v582_v36  ;;  %v600_v10 = vsub.f32 %v599_v0, %v582_v36 }
 0x1dd   : > { %v585_v3 = vmul.f32 %v584_v44, %v584_v44  ;;  %v601_v11 = vmul.f32 %v600_v10, %v600_v10 }
 0x1df   : > { %587 = vst [vmem:[#allocation1] ss:$2 sm:$0xff] %v585_v3 }
 0x1e6   : > { %v588_v37 = vld.sshfl [vmem:[#allocation1] sm:$0xff pattern:$0x75316420]  ;;  %v589_v12 = vld.sshfl [vmem:[#allocation1 + $0x8] sm:$0xff pattern:$0x75316420] }
 0x1e7   : > { %v592_v13 = vsel %vm323_vm9, %v588_v37, 0.0  ;;  %v593_v45 = vsel %vm323_vm9, %v589_v12, 0.0  ;;  %603 = vst [vmem:[#allocation1] ss:$2 sm:$0xff] %v601_v11 }
 0x1e8   : > { %v594_v54 = vadd.f32 %v593_v45, %v592_v13 }
 0x1ea   : > { %595 = vadd.xlane.f32.xlu0 %v594_v54 }
 0x1ee   : > { %v604_v14 = vld.sshfl [vmem:[#allocation1] sm:$0xff pattern:$0x75316420]  ;;  %v605_v15 = vld.sshfl [vmem:[#allocation1 + $0x8] sm:$0xff pattern:$0x75316420] }
 0x1ef   : > { %v608_v32 = vsel %vm323_vm9, %v604_v14, 0.0  ;;  %v609_v16 = vsel %vm323_vm9, %v605_v15, 0.0 }
 0x1f0   : > { %v610_v17 = vadd.f32 %v609_v16, %v608_v32 }
 0x1f2   : > { %611 = vadd.xlane.f32.xlu1 %v610_v17 }
 0x25d   : > { %v596_v21 = vpop.xlane.xlu0 %595 }
 0x265   : > { %v612_v22 = vpop.xlane.xlu1 %611 }
 0x266   : > { %v613_v62 = vadd.f32 %v612_v22, %v596_v21 }
 0x268   : > { %v614_v18 = vmul.f32 0.001953125, %v613_v62 }
 0x26a   : > { %v616_v23 = vadd.f32 1e-05, %v614_v18 }
 0x26c   : > { %927 = vrsqrt.f32 %v616_v23  ;;  %vm623_vm5 = vweird.f32 %v616_v23 }
 0x272   : > { %v928_v25 = vpop.eup %927 }
 0x273   : > { %v618_v26 = vmul.f32 %v928_v25, %v616_v23  ;;  %vm624_vm9 = vweird.f32 %v928_v25 }
 0x274   : > { %vm625_vm6 = vmor %vm623_vm5, %vm624_vm9 }
 0x275   : > { %v619_v27 = vmul.f32 %v928_v25, %v618_v26 }
 0x277   : > { %v620_v48 = vmul.f32 0.5, %v619_v27 }
 0x279   : > { %v621_v28 = vsub.f32 1.5, %v620_v48 }
 0x27b   : > { %v622_v34 = vmul.f32 %v928_v25, %v621_v28 }
 0x27d   : > { %v626_v30 = vsel %vm625_vm6, %v928_v25, %v622_v34 }
 0x27e   : > { %v627_v35 = vmul.f32 %v626_v30, %v615_v31 }
 0x280   : > { %634 = vperm.xlu1 %920, %v627_v35   ;;  %v629_v63 = vmul.f32 %v627_v35, %v573_v7 }
 0x282   : > { %v630_v43 = vsub.f32 %v628_v42, %v629_v63 }
 0x284   : > { %644 = vperm.xlu2 %923, %v630_v43  }
 0x28c   : > { %924 = vset.pattern.permute.xlu2 %v1061_v47 }
 0x28d   : > { %681 = vperm.xlu2 %924, %v631_v19  }
 0x295   : > { %925 = vset.pattern.permute.xlu2 %v1060_v24 }
 0x296   : > { %695 = vperm.xlu2 %925, %v631_v19  }
 0x2de   : > { %v645_v52 = vpop.permute.xlu2 %644 }
 0x2df   : > { %v649_v56 = vperm.slane %v645_v52, %v1202_v49 }
 0x2e7   : > { %v682_v40 = vpop.permute.xlu2 %681 }
 0x2f0   : > { %v696_v21 = vpop.permute.xlu2 %695 }
 0x2f2   : > { %v635_v53 = vpop.permute.xlu1 %634 }
 0x2f3   : > { %v639_v55 = vperm.slane %v635_v53, %v1202_v49 }
 0x2f5   : > { %v641_v29 = vmul.f32 %v639_v55, %v1423_v8  ;;  %v711_v41 = vmul.f32 %v639_v55, %v599_v0 }
 0x2f7   : > { %v651_v33 = vadd.f32 %v649_v56, %v641_v29  ;;  %v712_v46 = vadd.f32 %v711_v41, %v649_v56 }
 0x2f9   : > { %v684_v57 = vperm.slane %v651_v33, 2  ;;  %v685_v58 = vperm.slane %v651_v33, 6  ;;  %v732_v59 = vperm.slane %v712_v46, 2  ;;  %v733_v39 = vperm.slane %v712_v46, 6 }
 0x2fa   : > { %v658_v38 = vperm.slane %v651_v33, 0  ;;  %v659_v60 = vperm.slane %v651_v33, 4  ;;  %v670_v61 = vperm.slane %v651_v33, 1  ;;  %v671_v1 = vperm.slane %v651_v33, 5 }
 0x2fb   : > { %v688_v4 = vperm.slane %v684_v57, 2  ;;  %v689_v5 = vperm.slane %v685_v58, 2  ;;  %v736_v9 = vperm.slane %v732_v59, 2  ;;  %v737_v8 = vperm.slane %v733_v39, 2 }
 0x2fc   : > { %v662_v2 = vperm.slane %v658_v38, 0  ;;  %v663_v6 = vperm.slane %v659_v60, 0  ;;  %v674_v7 = vperm.slane %v670_v61, 1  ;;  %v675_v49 = vperm.slane %v671_v1, 1 }
 0x2fd   : > { %v690_v36 = vmul.f32 %v688_v4, %v682_v40  ;;  %v691_v44 = vmul.f32 %v689_v5, %v682_v40  ;;  %v698_v37 = vperm.slane %v651_v33, 3  ;;  %v699_v12 = vperm.slane %v651_v33, 7 }
 0x2fe   : > { %v664_v3 = vmul.f32 %v662_v2, %v655_v50  ;;  %v665_v0 = vmul.f32 %v663_v6, %v655_v50  ;;  %v676_v10 = vmul.f32 %v674_v7, %v668_v51  ;;  %v677_v11 = vmul.f32 %v675_v49, %v668_v51 }
 0x2ff   : > { %v714_v13 = vperm.slane %v712_v46, 0  ;;  %v715_v45 = vperm.slane %v712_v46, 4  ;;  %v722_v15 = vperm.slane %v712_v46, 1  ;;  %v723_v32 = vperm.slane %v712_v46, 5 }
 0x300   : > { %v678_v54 = vadd.f32 %v676_v10, %v664_v3  ;;  %v679_v14 = vadd.f32 %v677_v11, %v665_v0  ;;  %v702_v16 = vperm.slane %v698_v37, 3  ;;  %v703_v17 = vperm.slane %v699_v12, 3 }
 0x301   : > { %v718_v19 = vperm.slane %v714_v13, 0  ;;  %v719_v20 = vperm.slane %v715_v45, 0  ;;  %v726_v18 = vperm.slane %v722_v15, 1  ;;  %v727_v23 = vperm.slane %v723_v32, 1 }
 0x302   : > { %v692_v22 = vadd.f32 %v690_v36, %v678_v54  ;;  %v693_v62 = vadd.f32 %v691_v44, %v679_v14  ;;  %v742_v26 = vperm.slane %v712_v46, 3  ;;  %v743_v27 = vperm.slane %v712_v46, 7 }
 0x303   : > { %v720_v24 = vmul.f32 %v718_v19, %v655_v50  ;;  %v721_v25 = vmul.f32 %v719_v20, %v655_v50  ;;  %v728_v48 = vmul.f32 %v726_v18, %v668_v51  ;;  %v729_v28 = vmul.f32 %v727_v23, %v668_v51 }
 0x304   : > { %v704_v31 = vmul.f32 %v702_v16, %v696_v21  ;;  %v705_v34 = vmul.f32 %v703_v17, %v696_v21  ;;  %v738_v30 = vmul.f32 %v736_v9, %v682_v40  ;;  %v739_v35 = vmul.f32 %v737_v8, %v682_v40 }
 0x305   : > { %v746_v42 = vperm.slane %v742_v26, 3  ;;  %v747_v63 = vperm.slane %v743_v27, 3  ;;  %v730_v43 = vadd.f32 %v728_v48, %v720_v24  ;;  %v731_v47 = vadd.f32 %v729_v28, %v721_v25 }
 0x306   : > { %v706_v52 = vadd.f32 %v704_v31, %v692_v22  ;;  %v707_v53 = vadd.f32 %v705_v34, %v693_v62 }
 0x307   : > { %v740_v55 = vadd.f32 %v738_v30, %v730_v43  ;;  %v741_v56 = vadd.f32 %v739_v35, %v731_v47  ;;  %v748_v29 = vmul.f32 %v746_v42, %v696_v21  ;;  %v749_v41 = vmul.f32 %v747_v63, %v696_v21 }
 0x308   : > { %708 = vst [vmem:[#allocation9] sm:$0xff] %v706_v52 }
 0x309   : > { %709 = vst [vmem:[#allocation9 + $0x8] sm:$0xff] %v707_v53  ;;  %v750_v50 = vadd.f32 %v748_v29, %v740_v55  ;;  %v751_v33 = vadd.f32 %v749_v41, %v741_v56 }
 0x30b   : > { %753 = vst [vmem:[#allocation9 + $0x10] sm:$0xff] %v750_v50 }
 0x30c   : > { %754 = vst [vmem:[#allocation9 + $0x18] sm:$0xff] %v751_v33 }
 0x30d PF: > { %p872_p9 = scmp.eq.s32.totalorder %s1108_s25, 1  ;;  %s1062_s9 = smov [#allocation9]  }
 0x30e   : > { %s760_s10 = sshll.u32 %s1062_s9, 4  ;;  %s762_s13 = sshll.u32 %s1457_s6, 4  ;;  %s761_s10 = int_to_ptr.vmem [resolvable:$true] %s760_s10  ;;  %s763_s13 = int_to_ptr.hbm [resolvable:$true] %s762_s13 }
 0x30f   : > { %s1063_s14 = smov 256  }
 0x310   : > { %858 = dma.vmem_to_hbm [thread:$0]  (%p872_p9), %s761_s10, 512, %s763_s13, [#allocation6], %s1063_s14, %s1063_s14, %s1045_s16  }
 0x311   : > { %1030 = dma.done.wait (%p872_p9), [#allocation6], 512  }
 0x312   : > { %1032 = vsyncadd (%p872_p9), [#allocation6], 4294966784 }
 0x313 PF: > { %s19_s21 = sadd.s32 1, %s1035_s21  }
 0x314   : > { %p16_p10 = scmp.ge.s32.totalorder %s19_s21, 4  }
 0x316   :  { %18 = sbr.rel (!%p16_p10) target bundleno = 3 (0x3), region = 92 }
 0x31b   :  { %779 = vsyncpa [#allocation5], 1 }
 0x31c   :  { %781 = vsyncpa [#allocation5 + $0x1], 1 }
 0x31d   :  { %782 = vsyncpa [#allocation8], 1 }
 0x31e   :  { %783 = vsyncpa [#allocation6], 1 }
 0x31f   :  { %785 = vsyncpa [#allocation6 + $0x1], 1 }

</bundles_post_ra>
